<compile_context>
chip_gen: v7x
topology: tpu7x:2x2x1
jax: 0.10.0
libtpu: 0.0.40
codegen_flags: <defaults>
</compile_context>

<pallas_src>
import functools

import jax
import jax.numpy as jnp
from jax.experimental import pallas as pl
from jax.experimental.pallas import tpu as pltpu


def _graph_conv_kernel(a_ref, x_ref, wt_ref, b_ref, o_ref, *, bb, n, use_relu):
    """One grid step processes `bb` graphs.

    a_ref : (bb, n, n)     compute dtype (bf16 by default)
    x_ref : (bb*n, d_in)   compute dtype, graphs flattened along rows
    wt_ref: (d_in, dmp)    compute dtype, W^T zero-padded to dmp lanes
    b_ref : (1, dmp)       f32 bias (zero-padded)
    o_ref : (bb*n, dmp)    f32 output slab (lane-dense)
    """
    # Linear stage first (reassociated: A @ (X W^T) == (A X) W^T): one big
    # lane-dense GEMM covering all bb graphs in this block.
    xw = jnp.dot(x_ref[...], wt_ref[...],
                 preferred_element_type=jnp.float32)           # (bb*n, dmp) f32

    dmp = wt_ref.shape[1]
    # Hoist the bias broadcast out of the per-graph loop.
    bias = jnp.broadcast_to(b_ref[...], (n, dmp))              # (n, dmp) f32
    cdt = a_ref.dtype

    # Per-graph adjacency multiply (A is block-diagonal over graphs). `bb` is a
    # small static number, so a fully unrolled loop keeps everything simple 2-D
    # MXU ops with statically aligned slices.
    for bi in range(bb):
        xw_b = xw[bi * n:(bi + 1) * n, :].astype(cdt)                       # (n, dmp)
        z = jnp.dot(a_ref[bi], xw_b, preferred_element_type=jnp.float32)    # (n, dmp) f32
        z = z + bias
        if use_relu:
            z = jnp.maximum(z, 0.0)
        o_ref[bi * n:(bi + 1) * n, :] = z.astype(o_ref.dtype)


def _pick_block_b(B, n, d_in, dmp, in_itemsize):
    """Largest divisor of B that keeps the per-step block comfortably inside VMEM
    (Pallas double-buffers each operand) and keeps the static unroll short."""
    per_graph = (n * n + n * d_in) * in_itemsize + 2 * n * dmp * 4  # A, X, XW, out
    budget = 8 * 1024 * 1024
    cap = max(1, min(16, budget // max(per_graph, 1)))
    bb = 1
    for d in range(1, B + 1):
        if B % d == 0 and d <= cap:
            bb = d
    return bb


def graph_conv(a, x, w, b, *, use_relu=True, compute_dtype=jnp.bfloat16, block_b=None):
    """Pallas GraphConv forward: relu(A @ X @ W^T + b).

    a: (B, N, N) f32 adjacency
    x: (B, N, d_input) f32
    w: (d_model, d_input) f32  (PyTorch nn.Linear weight layout)
    b: (d_model,) f32
    Returns (B, N, d_model) f32.
    """
    B, N, d_in = x.shape
    d_model = w.shape[0]
    assert a.shape == (B, N, N)
    assert w.shape == (d_model, d_in)
    assert b.shape == (d_model,)

    # Lane-dense output: pad the model dim up to a multiple of 128. Padded weight
    # columns / bias entries are zero, so padded output columns are exactly zero
    # and get sliced off below.
    dmp = ((d_model + 127) // 128) * 128

    wt = jnp.pad(w.T.astype(compute_dtype), ((0, 0), (0, dmp - d_model)))    # (d_in, dmp)
    b2 = jnp.pad(b.astype(jnp.float32), (0, dmp - d_model)).reshape(1, dmp)  # (1, dmp)
    a_c = a.astype(compute_dtype)                                            # (B, N, N)
    x2 = x.reshape(B * N, d_in).astype(compute_dtype)                        # (B*N, d_in)

    in_itemsize = jnp.dtype(compute_dtype).itemsize
    bb = block_b if block_b is not None else _pick_block_b(B, N, d_in, dmp, in_itemsize)
    assert B % bb == 0, "block_b must divide the batch size"
    grid = (B // bb,)

    kernel = functools.partial(_graph_conv_kernel, bb=bb, n=N, use_relu=use_relu)

    out2 = pl.pallas_call(
        kernel,
        out_shape=jax.ShapeDtypeStruct((B * N, dmp), x.dtype),
        grid_spec=pltpu.PrefetchScalarGridSpec(
            num_scalar_prefetch=0,
            grid=grid,
            in_specs=[
                pl.BlockSpec((bb, N, N), lambda i: (i, 0, 0)),
                pl.BlockSpec((bb * N, d_in), lambda i: (i, 0)),
                pl.BlockSpec((d_in, dmp), lambda i: (0, 0)),
                pl.BlockSpec((1, dmp), lambda i: (0, 0)),
            ],
            out_specs=pl.BlockSpec((bb * N, dmp), lambda i: (i, 0)),
        ),
        # Batch-block axis is embarrassingly parallel -> lets megacore shard it.
        # TODO(synk): for large N, row-tile A/output with a second parallel axis
        # and a v7x-sized VMEM budget instead of loading the full (N, N) adjacency.
        compiler_params=pltpu.CompilerParams(
            dimension_semantics=("parallel",),
        ),
    )(a_c, x2, wt, b2)

    return out2[:, :d_model].reshape(B, N, d_model)


if __name__ == "__main__":
    key = jax.random.PRNGKey(0)
    B, N, d_input, d_model = 2, 8, 32, 32

    k_a, k_x, k_w, k_b = jax.random.split(key, 4)
    a = jax.random.uniform(k_a, (B, N, N), dtype=jnp.float32)
    x = jax.random.normal(k_x, (B, N, d_input), dtype=jnp.float32)
    # Mimic nn.Linear uniform(-1/sqrt(fan_in), 1/sqrt(fan_in)) init.
    bound = 1.0 / (d_input ** 0.5)
    w = jax.random.uniform(k_w, (d_model, d_input), minval=-bound, maxval=bound,
                           dtype=jnp.float32)
    b = jax.random.uniform(k_b, (d_model,), minval=-bound, maxval=bound,
                           dtype=jnp.float32)

    out = graph_conv(a, x, w, b)
    out = jax.block_until_ready(out)

    # f32 reference with the original (A @ X) @ W^T ordering (PyTorch semantics).
    ref = jnp.maximum(jnp.einsum("bij,bjd->bid", a, x) @ w.T + b, 0.0)
    assert out.shape == ref.shape == (B, N, d_model)
    # Kernel feeds the MXU bf16 (f32 accumulation) and reassociates to A @ (X W^T),
    # so compare with a bf16-appropriate tolerance.
    max_err = float(jnp.max(jnp.abs(out - ref)))
    assert jnp.allclose(out, ref, atol=5e-2, rtol=5e-2), f"max abs err {max_err}"

    print("KERNEL_OK")
</pallas_src>

<mosaic_0001>
module attributes {stable_mosaic.version = 11 : i64} {
  func.func @_graph_conv_kernel(%arg0: i32, %arg1: memref<2x8x8xbf16, #tpu.memory_space<vmem>>, %arg2: memref<16x32xbf16, #tpu.memory_space<vmem>>, %arg3: memref<32x128xbf16, #tpu.memory_space<vmem>>, %arg4: memref<1x128xf32, #tpu.memory_space<vmem>>, %arg5: memref<16x128xf32, #tpu.memory_space<vmem>>) attributes {dimension_semantics = [#tpu.dimension_semantics<parallel>], iteration_bounds = array<i64: 1>, scalar_prefetch = 0 : i64, scratch_operands = 0 : i64, tpu.core_type = #tpu.core_type<tc>, window_params = [{transform_indices = @transform_0, window_bounds = array<i64: 2, 8, 8>}, {transform_indices = @transform_1, window_bounds = array<i64: 16, 32>}, {pipeline_mode = #tpu.pipeline_mode<synchronous>, transform_indices = @transform_2, window_bounds = array<i64: 32, 128>}, {pipeline_mode = #tpu.pipeline_mode<synchronous>, transform_indices = @transform_3, window_bounds = array<i64: 1, 128>}, {transform_indices = @transform_4, window_bounds = array<i64: 16, 128>}]} {
    %c0 = arith.constant 0 : index
    %c0_0 = arith.constant 0 : index
    %0 = vector.load %arg2[%c0, %c0_0] : memref<16x32xbf16, #tpu.memory_space<vmem>>, vector<16x32xbf16>
    %c0_1 = arith.constant 0 : index
    %c0_2 = arith.constant 0 : index
    %1 = vector.load %arg3[%c0_1, %c0_2] : memref<32x128xbf16, #tpu.memory_space<vmem>>, vector<32x128xbf16>
    %cst = arith.constant dense<0.000000e+00> : vector<16x128xf32>
    %2 = tpu.matmul %0, %1, %cst {dimension_numbers = #tpu.dot_dimension_numbers<[1], [0], [0], [1], [0, 0, 1, 1], [], []>} : vector<16x32xbf16>, vector<32x128xbf16>, vector<16x128xf32> -> vector<16x128xf32>
    %c0_3 = arith.constant 0 : index
    %c0_4 = arith.constant 0 : index
    %3 = vector.load %arg4[%c0_3, %c0_4] : memref<1x128xf32, #tpu.memory_space<vmem>>, vector<1x128xf32>
    %4 = vector.shape_cast %3 : vector<1x128xf32> to vector<1x128xf32>
    %5 = vector.broadcast %4 : vector<1x128xf32> to vector<8x128xf32>
    %6 = vector.extract_strided_slice %2 {offsets = [0, 0], sizes = [8, 128], strides = [1, 1]} : vector<16x128xf32> to vector<8x128xf32>
    %7 = arith.truncf %6 : vector<8x128xf32> to vector<8x128xbf16>
    %c0_5 = arith.constant 0 : index
    %c0_6 = arith.constant 0 : index
    %c0_7 = arith.constant 0 : index
    %8 = vector.load %arg1[%c0_5, %c0_6, %c0_7] : memref<2x8x8xbf16, #tpu.memory_space<vmem>>, vector<1x8x8xbf16>
    %9 = vector.shape_cast %8 : vector<1x8x8xbf16> to vector<8x8xbf16>
    %cst_8 = arith.constant dense<0.000000e+00> : vector<8x128xf32>
    %10 = tpu.matmul %9, %7, %cst_8 {dimension_numbers = #tpu.dot_dimension_numbers<[1], [0], [0], [1], [0, 0, 1, 1], [], []>} : vector<8x8xbf16>, vector<8x128xbf16>, vector<8x128xf32> -> vector<8x128xf32>
    %11 = arith.addf %10, %5 : vector<8x128xf32>
    %cst_9 = arith.constant 0.000000e+00 : f32
    %12 = vector.broadcast %cst_9 : f32 to vector<8x128xf32>
    %13 = arith.maximumf %11, %12 : vector<8x128xf32>
    %c0_10 = arith.constant 0 : index
    %c0_11 = arith.constant 0 : index
    %14 = vector.load %arg5[%c0_10, %c0_11] : memref<16x128xf32, #tpu.memory_space<vmem>>, vector<8x128xf32>
    tpu.vector_store %arg5[%c0_10, %c0_11], %13 {strides = array<i32>} : memref<16x128xf32, #tpu.memory_space<vmem>>, vector<8x128xf32>,
    %15 = vector.extract_strided_slice %2 {offsets = [8, 0], sizes = [8, 128], strides = [1, 1]} : vector<16x128xf32> to vector<8x128xf32>
    %16 = arith.truncf %15 : vector<8x128xf32> to vector<8x128xbf16>
    %c1 = arith.constant 1 : index
    %c0_12 = arith.constant 0 : index
    %c0_13 = arith.constant 0 : index
    %17 = vector.load %arg1[%c1, %c0_12, %c0_13] : memref<2x8x8xbf16, #tpu.memory_space<vmem>>, vector<1x8x8xbf16>
    %18 = vector.shape_cast %17 : vector<1x8x8xbf16> to vector<8x8xbf16>
    %cst_14 = arith.constant dense<0.000000e+00> : vector<8x128xf32>
    %19 = tpu.matmul %18, %16, %cst_14 {dimension_numbers = #tpu.dot_dimension_numbers<[1], [0], [0], [1], [0, 0, 1, 1], [], []>} : vector<8x8xbf16>, vector<8x128xbf16>, vector<8x128xf32> -> vector<8x128xf32>
    %20 = arith.addf %19, %5 : vector<8x128xf32>
    %cst_15 = arith.constant 0.000000e+00 : f32
    %21 = vector.broadcast %cst_15 : f32 to vector<8x128xf32>
    %22 = arith.maximumf %20, %21 : vector<8x128xf32>
    %c8 = arith.constant 8 : index
    %c0_16 = arith.constant 0 : index
    %23 = vector.load %arg5[%c8, %c0_16] : memref<16x128xf32, #tpu.memory_space<vmem>>, vector<8x128xf32>
    tpu.vector_store %arg5[%c8, %c0_16], %22 {strides = array<i32>} : memref<16x128xf32, #tpu.memory_space<vmem>>, vector<8x128xf32>,
    return
  }
  func.func @transform_0(%arg0: i32) -> (i32, i32, i32) {
    %c0_i32 = arith.constant 0 : i32
    %c0_i32_0 = arith.constant 0 : i32
    %c0_i32_1 = arith.constant 0 : i32
    return %arg0, %c0_i32, %c0_i32_0 : i32, i32, i32
  }
  func.func @transform_1(%arg0: i32) -> (i32, i32) {
    %c0_i32 = arith.constant 0 : i32
    %c0_i32_0 = arith.constant 0 : i32
    return %arg0, %c0_i32 : i32, i32
  }
  func.func @transform_2(%arg0: i32) -> (i32, i32) {
    %c0_i32 = arith.constant 0 : i32
    %c0_i32_0 = arith.constant 0 : i32
    %c0_i32_1 = arith.constant 0 : i32
    return %c0_i32, %c0_i32_0 : i32, i32
  }
  func.func @transform_3(%arg0: i32) -> (i32, i32) {
    %c0_i32 = arith.constant 0 : i32
    %c0_i32_0 = arith.constant 0 : i32
    %c0_i32_1 = arith.constant 0 : i32
    return %c0_i32, %c0_i32_0 : i32, i32
  }
  func.func @transform_4(%arg0: i32) -> (i32, i32) {
    %c0_i32 = arith.constant 0 : i32
    %c0_i32_0 = arith.constant 0 : i32
    return %arg0, %c0_i32 : i32, i32
  }
}

</mosaic_0001>

<bundles_post_ra>
// kernel: tpu_custom_call.1
= control target key start
LH: loop header
LB: loop body
LE: loop exit
PB: predicated region body
PF: predicated region fallthrough
CT: control target
= control target key end

     0   :  { %9 = vsyncpa [#allocation3], 0  ;;  %s502_s0 = inlined_call_operand.hbm [shape: bf16[2,8,8], index: 0, kind: input, shape index: {}]   ;;  %s503_s1 = inlined_call_operand.hbm [shape: bf16[16,32], index: 1, kind: input, shape index: {}]   ;;  %s504_s2 = inlined_call_operand.hbm [shape: bf16[32,128], index: 2, kind: input, shape index: {}]   ;;  %s505_s3 = inlined_call_operand.vmem [shape: f32[1,128], index: 3, kind: input, shape index: {}]   ;;  %s506_s4 = inlined_call_operand.hbm [shape: f32[16,128], index: 4, kind: output, shape index: {}]  }
   0x1   :  { %10 = vsyncpa [#allocation6], 0 }
   0x2   :  { %11 = vsyncpa [#allocation4], 0  ;;  %s397_s15 = smov [#allocation5]   ;;  %s398_s17 = smov [#allocation2]  }
   0x3   :  { %s29_s16 = sshll.u32 %s397_s15, 4  ;;  %s17_s18 = sshll.u32 %s398_s17, 4  ;;  %s30_s16 = int_to_ptr.vmem [resolvable:$true] %s29_s16  ;;  %s432_s18 = int_to_ptr.vmem [resolvable:$true] %s17_s18 }
   0x4   :  { %s303_s21 = scalar_lea.hbm %s503_s1, 128 }
   0x5   :  { %p304_p0 = scmp.ne.s32.totalorder %s503_s1, %s303_s21  ;;  %p307_p1 = scmp.lt.u32.totalorder %s303_s21, %s503_s1 }
   0x7   :  { %p309_p2 = pnand %p307_p1, %p304_p0 }
   0x9   :  { %312 = shalt.err (!%p309_p2)
}
   0xa   :  { %s313_s26 = scalar_lea.vmem %s30_s16, 128  ;;  %p318_p4 = scmp.lt.s32.totalorder %s30_s16, %s30_s16 }
   0xb   :  { %p314_p3 = scmp.ne.s32.totalorder %s30_s16, %s313_s26  ;;  %p319_p5 = scmp.lt.s32.totalorder %s313_s26, %s313_s26 }
   0xd   :  { %p320_p6 = por %p319_p5, %p318_p4 }
   0xf   :  { %p321_p7 = pnand %p320_p6, %p314_p3 }
  0x11   :  { %324 = shalt.err (!%p321_p7)
}
  0x12   :  { %s399_s27 = smov 64   ;;  %s400_s28 = smov 4  }
  0x13   :  { %35 = dma.hbm_to_vmem [thread:$0]  %s503_s1, 128, %s30_s16, [#allocation6], %s399_s27, %s399_s27, %s400_s28  }
  0x14   :  { %s325_s7 = scalar_lea.hbm %s502_s0, 128 }
  0x15   :  { %p326_p8 = scmp.ne.s32.totalorder %s502_s0, %s325_s7  ;;  %p329_p9 = scmp.lt.u32.totalorder %s325_s7, %s502_s0 }
  0x17   :  { %p331_p10 = pnand %p329_p9, %p326_p8 }
  0x19   :  { %334 = shalt.err (!%p331_p10)
}
  0x1a   :  { %s335_s12 = scalar_lea.vmem %s432_s18, 128  ;;  %p340_p12 = scmp.lt.s32.totalorder %s432_s18, %s432_s18 }
  0x1b   :  { %p336_p11 = scmp.ne.s32.totalorder %s432_s18, %s335_s12  ;;  %p341_p13 = scmp.lt.s32.totalorder %s335_s12, %s335_s12 }
  0x1d   :  { %p342_p0 = por %p341_p13, %p340_p12 }
  0x1f   :  { %p343_p1 = pnand %p342_p0, %p336_p11 }
  0x21   :  { %346 = shalt.err (!%p343_p1)
}
  0x22   :  { %23 = dma.hbm_to_vmem [thread:$0]  %s502_s0, 128, %s432_s18, [#allocation3], %s399_s27, %s399_s27, %s400_s28  }
  0x23   :  { %s401_s14 = smov [#allocation7]   ;;  %s347_s19 = scalar_lea.hbm %s504_s2, 256 }
  0x24   :  { %s41_s15 = sshll.u32 %s401_s14, 4  ;;  %p348_p2 = scmp.ne.s32.totalorder %s504_s2, %s347_s19  ;;  %s42_s15 = int_to_ptr.vmem [resolvable:$true] %s41_s15 }
  0x25   :  { %p351_p3 = scmp.lt.u32.totalorder %s347_s19, %s504_s2 }
  0x27   :  { %p353_p4 = pnand %p351_p3, %p348_p2 }
  0x29   :  { %356 = shalt.err (!%p353_p4)
}
  0x2a   :  { %s357_s24 = scalar_lea.vmem %s42_s15, 256  ;;  %p362_p6 = scmp.lt.s32.totalorder %s42_s15, %s42_s15 }
  0x2b   :  { %p358_p5 = scmp.ne.s32.totalorder %s42_s15, %s357_s24  ;;  %p363_p7 = scmp.lt.s32.totalorder %s357_s24, %s357_s24 }
  0x2d   :  { %p364_p8 = por %p363_p7, %p362_p6 }
  0x2f   :  { %p365_p9 = pnand %p364_p8, %p358_p5 }
  0x31   :  { %368 = shalt.err (!%p365_p9)
}
  0x32   :  { %47 = dma.hbm_to_vmem [thread:$0]  %s504_s2, 256, %s42_s15, [#allocation6], %s399_s27, %s399_s27, %s400_s28  }
  0x33   :  { %391 = dma.done.wait [#allocation3], 128  }
  0x34   :  { %392 = vsyncadd [#allocation3], 4294967168 }
  0x35   :  { %393 = dma.done.wait [#allocation6], 384  }
  0x36   :  { %394 = vsyncadd [#allocation6], 4294966912  ;;  %v402_v0 = vmov 0.0   ;;  %vm403_vm0 = vmmov 0   ;;  %v300_v1 = vld [vmem:[#allocation7] sm:$0xff]   ;;  %v301_v2 = vld [vmem:[#allocation7 + $0x8] sm:$0xff]  }
  0x37   :  { %270 = vmatprep.subr.bf16.mxu0 %v402_v0  ;;  %274 = vmatprep.mubr.msk.bf16.mxu0 %vm403_vm0, %v402_v0  ;;  %v302_v3 = vld [vmem:[#allocation5] sm:$0xff]   ;;  %vm83_vm1 = vcmask 261120   ;;  %vm141_vm2 = vcmask 1043456   ;;  %v136_v11 = vld [vmem:[#allocation2] sm:$0xf]  ;;  %vm137_vm3 = vcmask 64512  }
  0x38   :  { %278 = vmatprep.subr.bf16.mxu1 %v402_v0  ;;  %280 = vmatprep.mubr.msk.bf16.mxu1 %vm403_vm0, %v402_v0  ;;  %v189_v13 = vld [vmem:[#allocation2 + $0x4] sm:$0xf]  ;;  %v260_v14 = vld [vmem:[%s505_s3] ss:$0 sm:$0xff]  ;;  %s404_s26 = smov [#allocation8]  }
  0x39   :  { %271 = vmatpush3.bf16.msra.mxu0 %v300_v1  ;;  %s243_s27 = sshll.u32 %s404_s26, 4  ;;  %s244_s27 = int_to_ptr.vmem [resolvable:$true] %s243_s27 }
  0x3a   :  { %272 = vmatprep.subr.bf16.mxu0 %v402_v0  ;;  %s369_s28 = scalar_lea.vmem %s244_s27, 256  ;;  %p374_p11 = scmp.lt.s32.totalorder %s244_s27, %s244_s27 }
  0x3b   :  { %p370_p10 = scmp.ne.s32.totalorder %s244_s27, %s369_s28  ;;  %p375_p12 = scmp.lt.s32.totalorder %s369_s28, %s369_s28 }
  0x3d   :  { %273 = vmatpush3.bf16.msra.mxu0 %v301_v2  ;;  %p376_p13 = por %p375_p12, %p374_p11 }
  0x3f   :  { %p377_p0 = pnand %p376_p13, %p370_p10 }
  0x40   :  { %275 = vmatmul.mubr.msk.bf16.vlgmr.msra.gmra.mrb[0].mxu0 %vm83_vm1, %v302_v3 }
 0x113   :  { %v121_v4 = vpop.f32.mrb[0].mxu0 }
 0x114   :  { %v135_v5 = vpack.c.bf16 %v121_v4, %v121_v4  ;;  %v276_v6 = vpop.f32.mrb[1].mxu0 }
 0x115   :  { %v124_v7 = vpop.f32.mrb[2].mxu0 }
 0x116   :  { %v187_v8 = vpack.c.bf16 %v124_v7, %v124_v7  ;;  %v277_v9 = vpop.f32.mrb[3].mxu0  ;;  %v143_v10 = vsel %vm141_vm2, %v135_v5, 0 }
 0x117   :  { %279 = vmatpush3.bf16.msra.mxu1 %v143_v10 }
 0x118   :  { %284 = vmatprep.subr.bf16.mxu1 %v402_v0  ;;  %v194_v12 = vsel %vm141_vm2, %v187_v8, 0 }
 0x11a   :  { %281 = vmatmul.mubr.msk.bf16.vlgmr.msra.gmra.mrb[0].mxu1 %vm137_vm3, %v136_v11 }
 0x11b   :  { %285 = vmatpush3.bf16.msra.mxu1 %v194_v12  ;;  %286 = vmatprep.mubr.msk.bf16.mxu1 %vm403_vm0, %v402_v0 }
 0x122   :  { %287 = vmatmul.mubr.msk.bf16.vlgmr.msra.gmra.mrb[4].mxu1 %vm137_vm3, %v189_v13 }
 0x1ed   :  { %v179_v15 = vpop.f32.mrb[0].mxu1 }
 0x1ee   :  { %v180_v16 = vadd.f32 %v260_v14, %v179_v15  ;;  %v282_v17 = vpop.f32.mrb[1].mxu1 }
 0x1ef   :  { %v182_v18 = vpop.f32.mrb[2].mxu1 }
 0x1f0   :  { %v185_v19 = vmax.f32 %v180_v16, 0.0  ;;  %v283_v20 = vpop.f32.mrb[3].mxu1 }
 0x1f2   :  { %186 = vst [vmem:[#allocation8] sm:$0xff] %v185_v19 }
 0x1f5   :  { %v230_v21 = vpop.f32.mrb[4].mxu1 }
 0x1f6   :  { %v231_v22 = vadd.f32 %v260_v14, %v230_v21  ;;  %v288_v23 = vpop.f32.mrb[5].mxu1 }
 0x1f7   :  { %v233_v24 = vpop.f32.mrb[6].mxu1 }
 0x1f8   :  { %v236_v25 = vmax.f32 %v231_v22, 0.0  ;;  %v289_v26 = vpop.f32.mrb[7].mxu1 }
 0x1fa   :  { %237 = vst [vmem:[#allocation8 + $0x8] sm:$0xff] %v236_v25 }
 0x1fb   :  { %380 = shalt.err (!%p377_p0)
}
 0x1fc   :  { %s381_s30 = scalar_lea.hbm %s506_s4, 256 }
 0x1fd   :  { %p382_p1 = scmp.ne.s32.totalorder %s506_s4, %s381_s30  ;;  %p385_p2 = scmp.lt.u32.totalorder %s381_s30, %s506_s4 }
 0x1ff   :  { %p387_p3 = pnand %p385_p2, %p382_p1 }
 0x201   :  { %390 = shalt.err (!%p387_p3)
}
 0x202   :  { %s405_s9 = smov 128   ;;  %s406_s10 = smov 8  }
 0x203   :  { %249 = dma.vmem_to_hbm [thread:$0]  %s244_s27, 256, %s506_s4, [#allocation4], %s405_s9, %s405_s9, %s406_s10  }
 0x204   :  { %395 = dma.done.wait [#allocation4], 256  }
 0x205   :  { %396 = vsyncadd [#allocation4], 4294967040 }
 0x206   :  { %253 = vsyncpa [#allocation3], 1 }
 0x207   :  { %254 = vsyncpa [#allocation6], 1 }
 0x208   :  { %255 = vsyncpa [#allocation4], 1 }

</bundles_post_ra>
